<compile_context>
chip_gen: v6e
topology: v6e:2x2x1
jax: 0.10.0
libtpu: 0.0.40
codegen_flags: <defaults>
</compile_context>

<pallas_src>
import functools

import jax
import jax.numpy as jnp
from jax import lax
from jax.experimental import pallas as pl
from jax.experimental.pallas import tpu as pltpu


def _round_up(v, m):
    return ((v + m - 1) // m) * m


def _sublane_multiple(dtype):
    # Rows per vreg sublane tile: f32 -> 8, bf16/f16 -> 16, int8/fp8 -> 32.
    itemsize = jnp.dtype(dtype).itemsize
    return {4: 8, 2: 16, 1: 32}.get(itemsize, 8)


# --------------------------------------------------------------------------
# VMEM budgeting (generation-safe: v7x has only 64 MiB physical per TC).
# --------------------------------------------------------------------------
_VMEM_TILE_BUDGET = 24 * 1024 * 1024   # double-buffered tile footprint target
_VMEM_LIMIT_BYTES = 48 * 1024 * 1024   # scoped limit: < v7x's 64 MiB physical


def _footprint_bytes(tm, tk, tn, in_itemsize):
    # Pallas double-buffers every auto-pipelined operand; out/acc counted f32.
    x_b = tm * tk * in_itemsize
    w_b = tk * tn * in_itemsize
    b_b = tn * 4
    o_b = tm * tn * 4
    return 2 * (x_b + w_b + b_b + o_b)


def _choose_kn_tiles(K, N, in_dtype, *, budget_tm=512):
    """Pick (tk, tn) once per parameter set (independent of batch)."""
    itemsize = jnp.dtype(in_dtype).itemsize
    Kp0 = _round_up(K, 128)
    Np0 = _round_up(N, 128)

    tk = min(Kp0, 4096)            # prefer the whole K in one grid step
    tn = min(Np0, 1024)            # big, lane-dense output tiles

    # v7x megacore: make sure a 'parallel' axis has >= 2 blocks when possible.
    if Np0 // tn < 2 and Np0 >= 256:
        tn = max(128, _round_up(Np0 // 2, 128))

    # Shrink until the double-buffered footprint fits the budget (worst-case tm).
    while _footprint_bytes(budget_tm, tk, tn, itemsize) > _VMEM_TILE_BUDGET:
        if tk > 512:
            tk = max(512, _round_up(tk // 2, 128))
        elif tn > 256:
            tn = max(256, _round_up(tn // 2, 128))
        elif tk > 128:
            tk = max(128, _round_up(tk // 2, 128))
        elif tn > 128:
            tn = 128
        else:
            break
    return tk, tn


# --------------------------------------------------------------------------
# Kernel bodies.  Weight arrives in canonical (K, N) orientation, so the MXU
# consumes each tile directly and the output stays lane-dense in N.
# --------------------------------------------------------------------------
def _linear_kernel_single_step(x_ref, w_ref, b_ref, o_ref, *, precision):
    # Whole K in one step: no accumulator, no read-modify-write on the output.
    acc = jnp.dot(x_ref[...], w_ref[...],
                  preferred_element_type=jnp.float32, precision=precision)
    o_ref[...] = (acc + b_ref[...].astype(jnp.float32)).astype(o_ref.dtype)


def _linear_kernel_multi_step(x_ref, w_ref, b_ref, o_ref, acc_ref, *, precision):
    k = pl.program_id(2)

    @pl.when(k == 0)
    def _():
        acc_ref[...] = jnp.broadcast_to(
            b_ref[...].astype(jnp.float32), acc_ref.shape)

    acc_ref[...] += jnp.dot(x_ref[...], w_ref[...],
                            preferred_element_type=jnp.float32,
                            precision=precision)

    @pl.when(k == pl.num_programs(2) - 1)
    def _():
        o_ref[...] = acc_ref[...].astype(o_ref.dtype)


# --------------------------------------------------------------------------
# Parameter prep (once) + per-call forward.
# --------------------------------------------------------------------------
def make_linear(weight, bias, *, precision=None, cast_operands_to_bf16=False):
    """weight: (out_feat, in_feat) = (N, K) torch layout; bias: (N,).

    Hoists the weight transpose + zero-padding out of the per-call path and
    returns a jitted `forward(x)` implementing flatten(x, 1) @ W.T + b.
    """
    N, K = weight.shape
    in_dtype = jnp.bfloat16 if cast_operands_to_bf16 else jnp.dtype(weight.dtype)
    tk, tn = _choose_kn_tiles(K, N, in_dtype)
    Kp = _round_up(K, tk)
    Np = _round_up(N, tn)

    # One-time host-side prep of the static parameters.
    w_kn = jnp.pad(weight.T.astype(in_dtype), ((0, Kp - K), (0, Np - N)))
    b_row = jnp.pad(bias.reshape(1, N).astype(jnp.float32), ((0, 0), (0, Np - N)))

    sub = _sublane_multiple(in_dtype)
    itemsize = jnp.dtype(in_dtype).itemsize

    def forward(x):
        B = x.shape[0]
        x2d = x.reshape(B, -1)                       # torch.flatten(x, 1)
        assert x2d.shape[1] == K, "flattened feature dim must equal in_feat_dim"
        out_dtype = x.dtype

        # M tile: one block for small/medium batch (weight streamed once),
        # 512-row blocks for large batch (fewer weight re-streams).
        tm = _round_up(B, sub) if B <= 512 else 512
        while tm > sub and _footprint_bytes(tm, tk, tn, itemsize) > _VMEM_TILE_BUDGET:
            tm = max(sub, _round_up(tm // 2, sub))
        Bp = _round_up(B, tm)

        xp = x2d.astype(in_dtype)
        if (Bp, Kp) != (B, K):
            # Zero pad: zeros along K are mathematically inert in the reduction.
            xp = jnp.pad(xp, ((0, Bp - B), (0, Kp - K)))

        grid = (Bp // tm, Np // tn, Kp // tk)
        k_steps = grid[2]

        if k_steps == 1:
            kernel = functools.partial(_linear_kernel_single_step,
                                       precision=precision)
            scratch = []
        else:
            kernel = functools.partial(_linear_kernel_multi_step,
                                       precision=precision)
            scratch = [pltpu.VMEM((tm, tn), jnp.float32)]

        out_p = pl.pallas_call(
            kernel,
            out_shape=jax.ShapeDtypeStruct((Bp, Np), out_dtype),
            grid_spec=pltpu.PrefetchScalarGridSpec(
                num_scalar_prefetch=0,
                grid=grid,
                in_specs=[
                    pl.BlockSpec((tm, tk), lambda i, j, k: (i, k)),   # x tile
                    pl.BlockSpec((tk, tn), lambda i, j, k: (k, j)),   # W tile (K, N)
                    pl.BlockSpec((1, tn), lambda i, j, k: (0, j)),    # bias row
                ],
                out_specs=pl.BlockSpec((tm, tn), lambda i, j, k: (i, j)),
                scratch_shapes=scratch,
            ),
            compiler_params=pltpu.CompilerParams(
                dimension_semantics=("parallel", "parallel", "arbitrary"),
                vmem_limit_bytes=_VMEM_LIMIT_BYTES,
            ),
        )(xp, w_kn, b_row)

        if (Bp, Np) != (B, N):
            out_p = out_p[:B, :N]
        return out_p

    return jax.jit(forward)


if __name__ == "__main__":
    # Shapes consistent with the module defaults Linear(768, 512).
    # Input has trailing dims to exercise torch.flatten(x, 1):
    #   (B, 3, 16, 16) -> flattened feature dim = 768.
    B = 4
    in_feat_dim = 3 * 16 * 16     # 768
    out_feat_dim = 512

    key = jax.random.PRNGKey(0)
    kx, kw, kb = jax.random.split(key, 3)

    x = jax.random.normal(kx, (B, 3, 16, 16), dtype=jnp.float32)
    # Deterministic synthetic params (same shapes as nn.Linear(768, 512)).
    bound = 1.0 / jnp.sqrt(in_feat_dim)
    weight = jax.random.uniform(
        kw, (out_feat_dim, in_feat_dim), minval=-bound, maxval=bound,
        dtype=jnp.float32)
    bias = jax.random.uniform(
        kb, (out_feat_dim,), minval=-bound, maxval=bound, dtype=jnp.float32)

    linear = make_linear(weight, bias)   # one-time param prep (transpose + pad)
    out = linear(x)
    out = jax.block_until_ready(out)

    # Reference check against plain JAX (same math as torch: x @ W.T + b).
    ref = x.reshape(B, -1) @ weight.T + bias
    assert out.shape == (B, out_feat_dim)
    assert jnp.allclose(out, ref, atol=1e-3, rtol=1e-3)

    print("KERNEL_OK")
</pallas_src>

<mosaic_0001>
module attributes {stable_mosaic.version = 11 : i64} {
  func.func @_linear_kernel_single_step(%arg0: i32, %arg1: i32, %arg2: i32, %arg3: memref<8x768xf32, #tpu.memory_space<vmem>>, %arg4: memref<768x256xf32, #tpu.memory_space<vmem>>, %arg5: memref<1x256xf32, #tpu.memory_space<vmem>>, %arg6: memref<8x256xf32, #tpu.memory_space<vmem>>) attributes {dimension_semantics = [#tpu.dimension_semantics<parallel>, #tpu.dimension_semantics<parallel>, #tpu.dimension_semantics<arbitrary>], iteration_bounds = array<i64: 1, 2, 1>, scalar_prefetch = 0 : i64, scratch_operands = 0 : i64, tpu.core_type = #tpu.core_type<tc>, window_params = [{transform_indices = @transform_0, window_bounds = array<i64: 8, 768>}, {transform_indices = @transform_1, window_bounds = array<i64: 768, 256>}, {transform_indices = @transform_2, window_bounds = array<i64: 1, 256>}, {transform_indices = @transform_3, window_bounds = array<i64: 8, 256>}]} {
    %c0 = arith.constant 0 : index
    %c0_0 = arith.constant 0 : index
    %0 = vector.load %arg3[%c0, %c0_0] : memref<8x768xf32, #tpu.memory_space<vmem>>, vector<8x768xf32>
    %c0_1 = arith.constant 0 : index
    %c0_2 = arith.constant 0 : index
    %1 = vector.load %arg4[%c0_1, %c0_2] : memref<768x256xf32, #tpu.memory_space<vmem>>, vector<768x256xf32>
    %cst = arith.constant dense<0.000000e+00> : vector<8x256xf32>
    %2 = tpu.matmul %0, %1, %cst {dimension_numbers = #tpu.dot_dimension_numbers<[1], [0], [0], [1], [0, 0, 1, 1], [], []>} : vector<8x768xf32>, vector<768x256xf32>, vector<8x256xf32> -> vector<8x256xf32>
    %c0_3 = arith.constant 0 : index
    %c0_4 = arith.constant 0 : index
    %3 = vector.load %arg5[%c0_3, %c0_4] : memref<1x256xf32, #tpu.memory_space<vmem>>, vector<1x256xf32>
    %4 = vector.broadcast %3 : vector<1x256xf32> to vector<8x256xf32>
    %5 = arith.addf %2, %4 : vector<8x256xf32>
    %c0_5 = arith.constant 0 : index
    %c0_6 = arith.constant 0 : index
    %6 = vector.load %arg6[%c0_5, %c0_6] : memref<8x256xf32, #tpu.memory_space<vmem>>, vector<8x256xf32>
    tpu.vector_store %arg6[%c0_5, %c0_6], %5 {strides = array<i32>} : memref<8x256xf32, #tpu.memory_space<vmem>>, vector<8x256xf32>,
    return
  }
  func.func @transform_0(%arg0: i32, %arg1: i32, %arg2: i32) -> (i32, i32) {
    %c0_i32 = arith.constant 0 : i32
    return %arg0, %arg2 : i32, i32
  }
  func.func @transform_1(%arg0: i32, %arg1: i32, %arg2: i32) -> (i32, i32) {
    %c0_i32 = arith.constant 0 : i32
    return %arg2, %arg1 : i32, i32
  }
  func.func @transform_2(%arg0: i32, %arg1: i32, %arg2: i32) -> (i32, i32) {
    %c0_i32 = arith.constant 0 : i32
    %c0_i32_0 = arith.constant 0 : i32
    return %c0_i32, %arg1 : i32, i32
  }
  func.func @transform_3(%arg0: i32, %arg1: i32, %arg2: i32) -> (i32, i32) {
    %c0_i32 = arith.constant 0 : i32
    return %arg0, %arg1 : i32, i32
  }
}

</mosaic_0001>

<bundles_post_ra>
// kernel: forward.1
= control target key start
LH: loop header
LB: loop body
LE: loop exit
PB: predicated region body
PF: predicated region fallthrough
CT: control target
= control target key end

     0   :  { %8 = vsyncpa [#allocation3], 0  ;;  %s1424_s0 = inlined_call_operand.vmem [shape: f32[8,768], index: 0, kind: input, shape index: {}]   ;;  %s1425_s1 = inlined_call_operand.hbm [shape: f32[768,512], index: 1, kind: input, shape index: {}]   ;;  %s1426_s2 = inlined_call_operand.hbm [shape: f32[1,512], index: 2, kind: input, shape index: {}]   ;;  %s1427_s3 = inlined_call_operand.vmem [shape: f32[8,512], index: 3, kind: output, shape index: {}]  }
   0x1   :  { %10 = vsyncpa [#allocation3 + $0x1], 0 }
   0x2   :  { %11 = vsyncpa [#allocation5], 0 }
   0x3   :  { %13 = vsyncpa [#allocation5 + $0x1], 0  ;;  %s1090_s12 = smov 0   ;;  %s1092_s13 = smov 0  }
   0x4   :  { %s1094_s14 = smov 0   ;;  %s1096_s15 = smov 0  }
   0x5   :  { %s1098_s16 = smov 0   ;;  %s1100_s17 = smov 0  }
   0x6 LB: > { %s870_s18 = sadd.s32 4294967295, %s1063_s17   ;;  %s34_s19 = sadd.s32 1, %s1059_s16  ;;  %s1063_s17 = sphi %s1100_s17, %s19_s17   ;;  %s1059_s16 = sphi %s1098_s16, %s1435_s16   ;;  %s1055_s15 = sphi %s1096_s15, %s1434_s15   ;;  %s1051_s14 = sphi %s1094_s14, %s1433_s14   ;;  %s1047_s13 = sphi %s1092_s13, %s1432_s13   ;;  %s1043_s12 = sphi %s1090_s12, %s1431_s12  }
   0x7   : > { %p36_p0 = scmp.ge.s32.totalorder %s34_s19, 2  ;;  %s75_s20 = sadd.s32 1, %s1051_s14 }
   0x8   : > { %p82_p1 = scmp.ne.s32.totalorder %s1051_s14, %s1047_s13  ;;  %p83_p2 = scmp.eq.s32.totalorder %s1063_s17, 0 }
   0x9   : > { %s1437_s19 = smov (%p36_p0, %s34_s19), 0  ;;  %p88_p4 = scmp.ne.s32.totalorder %s1047_s13, %s1043_s12 }
   0xa   : > { %p84_p3 = por %p83_p2, %p82_p1  ;;  %s71_s21 = ssub.s32 %s1059_s16, %s1437_s19 }
   0xb   : > { %p89_p5 = scmp.eq.s32.totalorder %s870_s18, 0  ;;  %p73_p6 = scmp.eq.s32.totalorder %s71_s21, 0 }
   0xc   : > { %p901_p8 = scmp.lt.s32.totalorder %s1063_s17, 2  ;;  %s1138_s24 = sand.u32 1, %s1051_s14  }
   0xd   : > { %p1129_p7 = por %p89_p5, %p88_p4  ;;  %s886_s25 = sshll.u32 %s1059_s16, 8 }
   0xe   : > { %s1135_s23 = scalar_select %p73_p6, %s1051_s14, %s75_s20  }
   0xf   : > { %s888_s26 = smul.u32 1536, %s1138_s24  ;;  %s192_s29 = scalar_lea.hbm %s1425_s1, %s886_s25 }
  0x10   : > { %p1145_p9 = pnand %p901_p8, %p84_p3  ;;  %p880_p10 = scmp.ge.s32.totalorder %s1063_s17, 1 }
  0x11   : > { %s183_s4 = scalar_lea.vmem [#allocation2], %s888_s26  ;;  %s180_s6 = scalar_lea.sflag [#allocation3], %s1138_s24 }
  0x12   : > { %s193_s5 = sshll.u32 %s183_s4, 4  ;;  %p955_p11 = pneg %p1145_p9  ;;  %s194_s5 = int_to_ptr.vmem [resolvable:$true] %s193_s5 }
  0x13   : > { %s966_s7 = scalar_lea.vmem %s194_s5, 24576  ;;  %s1065_s8 = smov [#allocation2]  }
  0x14   : > { %p967_p12 = scmp.ne.s32.totalorder %s194_s5, %s966_s7  ;;  %s971_s9 = sshll.u32 %s1065_s8, 4  ;;  %s972_s9 = int_to_ptr.vmem [resolvable:$false] %s971_s9 }
  0x15   : > { %s973_s10 = scalar_lea.vmem %s972_s9, 49152  ;;  %p974_p1 = scmp.lt.s32.totalorder %s194_s5, %s972_s9 }
  0x16   : > { %p969_p13 = pnand %p967_p12, %p955_p11  ;;  %p975_p2 = scmp.lt.s32.totalorder %s973_s10, %s966_s7 }
  0x18   : > { %p970_p0 = pneg %p969_p13  ;;  %p976_p3 = por %p975_p2, %p974_p1 }
  0x1a   : > { %p977_p4 = pnand %p976_p3, %p970_p0 }
  0x1c   : > { %980 = shalt.err (!%p977_p4)
}
  0x1d   : > { %s1066_s11 = smov 512   ;;  %s1067_s12 = smov 256  }
  0x1e   : > { %s1068_s18 = smov 16   ;;  %p220_p5 = scmp.lt.s32.totalorder %s1063_s17, 3 }
  0x1f   : > { %897 = dma.hbm_to_vmem [thread:$0]  (!%p1145_p9), %s192_s29, 24576, %s194_s5, %s180_s6, %s1066_s11, %s1067_s12, %s1068_s18  }
  0x20   : > { %s877_s20 = sshll.u32 %s1138_s24, 1  ;;  %s887_s21 = sshll.u32 %s1059_s16, 5 }
  0x21   : > { %p1163_p6 = pnand %p880_p10, %p220_p5  ;;  %s213_s28 = scalar_lea.hbm %s1426_s2, %s887_s21 }
  0x22   : > { %s207_s4 = scalar_lea.vmem [#allocation4], %s877_s20  ;;  %s204_s8 = scalar_lea.sflag [#allocation5], %s1138_s24 }
  0x23   : > { %s215_s7 = sshll.u32 %s207_s4, 4  ;;  %s1069_s29 = smov [#allocation4]   ;;  %s216_s7 = int_to_ptr.vmem [resolvable:$true] %s215_s7 }
  0x24   : > { %s994_s9 = scalar_lea.vmem %s216_s7, 32  ;;  %s999_s5 = sshll.u32 %s1069_s29, 4  ;;  %s1000_s5 = int_to_ptr.vmem [resolvable:$false] %s999_s5 }
  0x25   : > { %p995_p8 = scmp.ne.s32.totalorder %s216_s7, %s994_s9  ;;  %s1001_s6 = scalar_lea.vmem %s1000_s5, 64 }
  0x26   : > { %p1002_p10 = scmp.lt.s32.totalorder %s216_s7, %s1000_s5  ;;  %p1003_p0 = scmp.lt.s32.totalorder %s1001_s6, %s994_s9 }
  0x27   : > { %p997_p12 = pnand %p995_p8, %p955_p11 }
  0x28   : > { %p1004_p1 = por %p1003_p0, %p1002_p10 }
  0x29   : > { %p998_p13 = pneg %p997_p12 }
  0x2b   : > { %p1005_p2 = pnand %p1004_p1, %p998_p13 }
  0x2d   : > { %1008 = shalt.err (!%p1005_p2)
}
  0x2e   : > { %900 = dma.hbm_to_vmem [thread:$0]  (!%p1145_p9), %s213_s28, 32, %s216_s7, %s204_s8  }
  0x2f   : > { %224 = sbr.rel (%p1163_p6) target bundleno = 384 (0x180), region = 32  ;;  %s226_s24 = sand.u32 (!%p1163_p6), 1, %s1047_s13  }
  0x30   : > { %s889_s10 = smul.u32 (!%p1163_p6), 1536, %s226_s24  ;;  %s227_s11 = scalar_lea.sflag (!%p1163_p6), [#allocation3], %s226_s24 }
  0x32   : > { %s1179_s12 = scalar_lea.vmem (!%p1163_p6), [#allocation2], %s889_s10 }
  0x34   : > { %1034 = dma.done.wait (%p1129_p7), %s227_s11, 24576  }
  0x35   : > { %1036 = vsyncadd (%p1129_p7), %s227_s11, 4294942720  ;;  %s881_s18 = sshll.u32 %s226_s24, 1  ;;  %s236_s20 = scalar_lea.sflag [#allocation5], %s226_s24 }
  0x36   : > { %s1185_s30 = scalar_lea.vmem [#allocation4], %s881_s18 }
  0x37   : > { %1038 = dma.done.wait (%p1129_p7), %s236_s20, 32  }
  0x38   : > { %1040 = vsyncadd (%p1129_p7), %s236_s20, 4294967264  ;;  %v340_v0 = vld [vmem:[%s1179_s12 + $0xf8] sm:$0xff]  ;;  %v339_v1 = vld [vmem:[%s1179_s12 + $0xf0] sm:$0xff]  ;;  %s882_s6 = sshll.u32 %s1055_s15, 1 }
  0x39   : > { %v338_v2 = vld [vmem:[%s1179_s12 + $0xe8] sm:$0xff]  ;;  %513 = vmatprep.subr.mxu0 %v340_v0  ;;  %v404_v3 = vld [vmem:[%s1179_s12 + $0x2f8] sm:$0xff]  ;;  %v337_v4 = vld [vmem:[%s1179_s12 + $0xe0] sm:$0xff]  ;;  %p296_p7 = scmp.lt.s32.totalorder %s882_s6, 3 }
  0x3a   : > { %v403_v5 = vld [vmem:[%s1179_s12 + $0x2f0] sm:$0xff]  ;;  %514 = vmatpush1.msra.mxu0 %v339_v1  ;;  %584 = vmatprep.subr.mxu1 %v404_v3  ;;  %v336_v6 = vld [vmem:[%s1179_s12 + $0xd8] sm:$0xff]  ;;  %v402_v7 = vld [vmem:[%s1179_s12 + $0x2e8] sm:$0xff] }
  0x3b   : > { %515 = vmatprep.subr.mxu0 %v338_v2  ;;  %585 = vmatpush1.msra.mxu1 %v403_v5  ;;  %v335_v8 = vld [vmem:[%s1179_s12 + $0xd0] sm:$0xff]  ;;  %v401_v9 = vld [vmem:[%s1179_s12 + $0x2e0] sm:$0xff]  ;;  %v400_v10 = vld [vmem:[%s1179_s12 + $0x2d8] sm:$0xff]  ;;  %s1439_s6 = smov (!%p296_p7, %s882_s6), 3 }
  0x3c   : > { %516 = vmatpush1.msra.mxu0 %v337_v4  ;;  %586 = vmatprep.subr.mxu1 %v402_v7  ;;  %v334_v11 = vld [vmem:[%s1179_s12 + $0xc8] sm:$0xff]  ;;  %v399_v12 = vld [vmem:[%s1179_s12 + $0x2d0] sm:$0xff]  ;;  %v333_v13 = vld [vmem:[%s1179_s12 + $0xc0] sm:$0xff]  ;;  %s883_s24 = sshll.u32 %s1439_s6, 3 }
  0x3d   : > { %517 = vmatprep.subr.mxu0 %v336_v6  ;;  %587 = vmatpush1.msra.mxu1 %v401_v9  ;;  %v398_v14 = vld [vmem:[%s1179_s12 + $0x2c8] sm:$0xff]  ;;  %v332_v15 = vld [vmem:[%s1179_s12 + $0xb8] sm:$0xff]  ;;  %v397_v16 = vld [vmem:[%s1179_s12 + $0x2c0] sm:$0xff] }
  0x3e   : > { %518 = vmatpush1.msra.mxu0 %v335_v8  ;;  %588 = vmatprep.subr.mxu1 %v400_v10  ;;  %v331_v17 = vld [vmem:[%s1179_s12 + $0xb0] sm:$0xff]  ;;  %v396_v18 = vld [vmem:[%s1179_s12 + $0x2b8] sm:$0xff]  ;;  %v330_v19 = vld [vmem:[%s1179_s12 + $0xa8] sm:$0xff] }
  0x3f   : > { %519 = vmatprep.subr.mxu0 %v334_v11  ;;  %589 = vmatpush1.msra.mxu1 %v399_v12  ;;  %v395_v20 = vld [vmem:[%s1179_s12 + $0x2b0] sm:$0xff]  ;;  %v329_v21 = vld [vmem:[%s1179_s12 + $0xa0] sm:$0xff]  ;;  %v394_v22 = vld [vmem:[%s1179_s12 + $0x2a8] sm:$0xff] }
  0x40   : > { %520 = vmatpush1.msra.mxu0 %v333_v13  ;;  %590 = vmatprep.subr.mxu1 %v398_v14  ;;  %v328_v23 = vld [vmem:[%s1179_s12 + $0x98] sm:$0xff]  ;;  %v393_v24 = vld [vmem:[%s1179_s12 + $0x2a0] sm:$0xff]  ;;  %v327_v25 = vld [vmem:[%s1179_s12 + $0x90] sm:$0xff] }
  0x41   : > { %521 = vmatprep.subr.mxu0 %v332_v15  ;;  %591 = vmatpush1.msra.mxu1 %v397_v16  ;;  %v392_v26 = vld [vmem:[%s1179_s12 + $0x298] sm:$0xff]  ;;  %v326_v27 = vld [vmem:[%s1179_s12 + $0x88] sm:$0xff]  ;;  %v391_v28 = vld [vmem:[%s1179_s12 + $0x290] sm:$0xff] }
  0x42   : > { %522 = vmatpush1.msra.mxu0 %v331_v17  ;;  %592 = vmatprep.subr.mxu1 %v396_v18  ;;  %v325_v29 = vld [vmem:[%s1179_s12 + $0x80] sm:$0xff]  ;;  %v390_v30 = vld [vmem:[%s1179_s12 + $0x288] sm:$0xff]  ;;  %v324_v31 = vld [vmem:[%s1179_s12 + $0x78] sm:$0xff] }
  0x43   : > { %523 = vmatprep.subr.mxu0 %v330_v19  ;;  %593 = vmatpush1.msra.mxu1 %v395_v20  ;;  %v389_v32 = vld [vmem:[%s1179_s12 + $0x280] sm:$0xff]  ;;  %v323_v33 = vld [vmem:[%s1179_s12 + $0x70] sm:$0xff]  ;;  %v388_v34 = vld [vmem:[%s1179_s12 + $0x278] sm:$0xff] }
  0x44   : > { %524 = vmatpush1.msra.mxu0 %v329_v21  ;;  %594 = vmatprep.subr.mxu1 %v394_v22  ;;  %v322_v35 = vld [vmem:[%s1179_s12 + $0x68] sm:$0xff]  ;;  %v387_v36 = vld [vmem:[%s1179_s12 + $0x270] sm:$0xff]  ;;  %v321_v37 = vld [vmem:[%s1179_s12 + $0x60] sm:$0xff] }
  0x45   : > { %525 = vmatprep.subr.mxu0 %v328_v23  ;;  %595 = vmatpush1.msra.mxu1 %v393_v24  ;;  %v386_v38 = vld [vmem:[%s1179_s12 + $0x268] sm:$0xff]  ;;  %v320_v39 = vld [vmem:[%s1179_s12 + $0x58] sm:$0xff]  ;;  %v385_v40 = vld [vmem:[%s1179_s12 + $0x260] sm:$0xff] }
  0x46   : > { %526 = vmatpush1.msra.mxu0 %v327_v25  ;;  %596 = vmatprep.subr.mxu1 %v392_v26  ;;  %v319_v41 = vld [vmem:[%s1179_s12 + $0x50] sm:$0xff]  ;;  %v384_v42 = vld [vmem:[%s1179_s12 + $0x258] sm:$0xff]  ;;  %v318_v43 = vld [vmem:[%s1179_s12 + $0x48] sm:$0xff] }
  0x47   : > { %527 = vmatprep.subr.mxu0 %v326_v27  ;;  %597 = vmatpush1.msra.mxu1 %v391_v28  ;;  %v383_v44 = vld [vmem:[%s1179_s12 + $0x250] sm:$0xff]  ;;  %v317_v45 = vld [vmem:[%s1179_s12 + $0x40] sm:$0xff]  ;;  %v382_v46 = vld [vmem:[%s1179_s12 + $0x248] sm:$0xff] }
  0x48   : > { %528 = vmatpush1.msra.mxu0 %v325_v29  ;;  %598 = vmatprep.subr.mxu1 %v390_v30  ;;  %v316_v47 = vld [vmem:[%s1179_s12 + $0x38] sm:$0xff]  ;;  %v381_v48 = vld [vmem:[%s1179_s12 + $0x240] sm:$0xff]  ;;  %v315_v49 = vld [vmem:[%s1179_s12 + $0x30] sm:$0xff] }
  0x49   : > { %529 = vmatprep.subr.mxu0 %v324_v31  ;;  %599 = vmatpush1.msra.mxu1 %v389_v32  ;;  %v380_v50 = vld [vmem:[%s1179_s12 + $0x238] sm:$0xff]  ;;  %v314_v51 = vld [vmem:[%s1179_s12 + $0x28] sm:$0xff]  ;;  %v379_v52 = vld [vmem:[%s1179_s12 + $0x230] sm:$0xff] }
  0x4a   : > { %530 = vmatpush1.msra.mxu0 %v323_v33  ;;  %600 = vmatprep.subr.mxu1 %v388_v34  ;;  %v313_v53 = vld [vmem:[%s1179_s12 + $0x20] sm:$0xff]  ;;  %v378_v54 = vld [vmem:[%s1179_s12 + $0x228] sm:$0xff]  ;;  %v312_v55 = vld [vmem:[%s1179_s12 + $0x18] sm:$0xff] }
  0x4b   : > { %531 = vmatprep.subr.mxu0 %v322_v35  ;;  %601 = vmatpush1.msra.mxu1 %v387_v36  ;;  %v377_v56 = vld [vmem:[%s1179_s12 + $0x220] sm:$0xff]  ;;  %v311_v57 = vld [vmem:[%s1179_s12 + $0x10] sm:$0xff]  ;;  %v376_v58 = vld [vmem:[%s1179_s12 + $0x218] sm:$0xff] }
  0x4c   : > { %532 = vmatpush1.msra.mxu0 %v321_v37  ;;  %602 = vmatprep.subr.mxu1 %v386_v38  ;;  %v310_v59 = vld [vmem:[%s1179_s12 + $0x8] sm:$0xff]  ;;  %v375_v60 = vld [vmem:[%s1179_s12 + $0x210] sm:$0xff]  ;;  %v309_v61 = vld [vmem:[%s1179_s12] sm:$0xff] }
  0x4d   : > { %533 = vmatprep.subr.mxu0 %v320_v39  ;;  %603 = vmatpush1.msra.mxu1 %v385_v40  ;;  %v374_v62 = vld [vmem:[%s1179_s12 + $0x208] sm:$0xff]  ;;  %v372_v63 = vld [vmem:[%s1179_s12 + $0x1f8] sm:$0xff]  ;;  %v373_v0 = vld [vmem:[%s1179_s12 + $0x200] sm:$0xff] }
  0x4e   : > { %534 = vmatpush1.msra.mxu0 %v319_v41  ;;  %604 = vmatprep.subr.mxu1 %v384_v42  ;;  %v371_v1 = vld [vmem:[%s1179_s12 + $0x1f0] sm:$0xff]  ;;  %v436_v2 = vld [vmem:[%s1179_s12 + $0x3f8] sm:$0xff]  ;;  %v370_v3 = vld [vmem:[%s1179_s12 + $0x1e8] sm:$0xff] }
  0x4f   : > { %535 = vmatprep.subr.mxu0 %v318_v43  ;;  %605 = vmatpush1.msra.mxu1 %v383_v44  ;;  %v435_v4 = vld [vmem:[%s1179_s12 + $0x3f0] sm:$0xff]  ;;  %v369_v5 = vld [vmem:[%s1179_s12 + $0x1e0] sm:$0xff]  ;;  %v434_v6 = vld [vmem:[%s1179_s12 + $0x3e8] sm:$0xff] }
  0x50   : > { %536 = vmatpush1.msra.mxu0 %v317_v45  ;;  %606 = vmatprep.subr.mxu1 %v382_v46  ;;  %v368_v7 = vld [vmem:[%s1179_s12 + $0x1d8] sm:$0xff]  ;;  %v433_v8 = vld [vmem:[%s1179_s12 + $0x3e0] sm:$0xff]  ;;  %v367_v9 = vld [vmem:[%s1179_s12 + $0x1d0] sm:$0xff] }
  0x51   : > { %537 = vmatprep.subr.mxu0 %v316_v47  ;;  %607 = vmatpush1.msra.mxu1 %v381_v48  ;;  %v432_v10 = vld [vmem:[%s1179_s12 + $0x3d8] sm:$0xff]  ;;  %v366_v11 = vld [vmem:[%s1179_s12 + $0x1c8] sm:$0xff]  ;;  %v431_v12 = vld [vmem:[%s1179_s12 + $0x3d0] sm:$0xff] }
  0x52   : > { %538 = vmatpush1.msra.mxu0 %v315_v49  ;;  %608 = vmatprep.subr.mxu1 %v380_v50  ;;  %v365_v13 = vld [vmem:[%s1179_s12 + $0x1c0] sm:$0xff]  ;;  %v430_v14 = vld [vmem:[%s1179_s12 + $0x3c8] sm:$0xff]  ;;  %v364_v15 = vld [vmem:[%s1179_s12 + $0x1b8] sm:$0xff] }
  0x53   : > { %539 = vmatprep.subr.mxu0 %v314_v51  ;;  %609 = vmatpush1.msra.mxu1 %v379_v52  ;;  %v429_v16 = vld [vmem:[%s1179_s12 + $0x3c0] sm:$0xff]  ;;  %v363_v17 = vld [vmem:[%s1179_s12 + $0x1b0] sm:$0xff]  ;;  %v428_v18 = vld [vmem:[%s1179_s12 + $0x3b8] sm:$0xff] }
  0x54   : > { %540 = vmatpush1.msra.mxu0 %v313_v53  ;;  %610 = vmatprep.subr.mxu1 %v378_v54  ;;  %v362_v19 = vld [vmem:[%s1179_s12 + $0x1a8] sm:$0xff]  ;;  %v427_v20 = vld [vmem:[%s1179_s12 + $0x3b0] sm:$0xff]  ;;  %v361_v21 = vld [vmem:[%s1179_s12 + $0x1a0] sm:$0xff] }
  0x55   : > { %541 = vmatprep.subr.mxu0 %v312_v55  ;;  %611 = vmatpush1.msra.mxu1 %v377_v56  ;;  %v426_v22 = vld [vmem:[%s1179_s12 + $0x3a8] sm:$0xff]  ;;  %v360_v23 = vld [vmem:[%s1179_s12 + $0x198] sm:$0xff]  ;;  %v425_v24 = vld [vmem:[%s1179_s12 + $0x3a0] sm:$0xff] }
  0x56   : > { %542 = vmatpush1.msra.mxu0 %v311_v57  ;;  %612 = vmatprep.subr.mxu1 %v376_v58  ;;  %v359_v25 = vld [vmem:[%s1179_s12 + $0x190] sm:$0xff]  ;;  %v424_v26 = vld [vmem:[%s1179_s12 + $0x398] sm:$0xff]  ;;  %v358_v27 = vld [vmem:[%s1179_s12 + $0x188] sm:$0xff] }
  0x57   : > { %543 = vmatprep.subr.mxu0 %v310_v59  ;;  %613 = vmatpush1.msra.mxu1 %v375_v60  ;;  %v423_v28 = vld [vmem:[%s1179_s12 + $0x390] sm:$0xff]  ;;  %v357_v29 = vld [vmem:[%s1179_s12 + $0x180] sm:$0xff]  ;;  %v422_v30 = vld [vmem:[%s1179_s12 + $0x388] sm:$0xff] }
  0x58   : > { %544 = vmatpush1.msra.mxu0 %v309_v61  ;;  %614 = vmatprep.subr.mxu1 %v374_v62  ;;  %v356_v31 = vld [vmem:[%s1179_s12 + $0x178] sm:$0xff]  ;;  %v421_v32 = vld [vmem:[%s1179_s12 + $0x380] sm:$0xff]  ;;  %v355_v33 = vld [vmem:[%s1179_s12 + $0x170] sm:$0xff] }
  0x59   : > { %545 = vmatprep.subr.mxu0 %v372_v63  ;;  %615 = vmatpush1.msra.mxu1 %v373_v0  ;;  %v420_v34 = vld [vmem:[%s1179_s12 + $0x378] sm:$0xff]  ;;  %v354_v35 = vld [vmem:[%s1179_s12 + $0x168] sm:$0xff]  ;;  %v419_v36 = vld [vmem:[%s1179_s12 + $0x370] sm:$0xff] }
  0x5a   : > { %546 = vmatpush2.msra.mxu0 %v371_v1  ;;  %616 = vmatprep.subr.mxu1 %v436_v2  ;;  %v353_v37 = vld [vmem:[%s1179_s12 + $0x160] sm:$0xff]  ;;  %v418_v38 = vld [vmem:[%s1179_s12 + $0x368] sm:$0xff]  ;;  %v352_v39 = vld [vmem:[%s1179_s12 + $0x158] sm:$0xff] }
  0x5b   : > { %547 = vmatprep.subr.mxu0 %v370_v3  ;;  %617 = vmatpush2.msra.mxu1 %v435_v4  ;;  %v417_v40 = vld [vmem:[%s1179_s12 + $0x360] sm:$0xff]  ;;  %v351_v41 = vld [vmem:[%s1179_s12 + $0x150] sm:$0xff]  ;;  %v416_v42 = vld [vmem:[%s1179_s12 + $0x358] sm:$0xff] }
  0x5c   : > { %548 = vmatpush2.msra.mxu0 %v369_v5  ;;  %618 = vmatprep.subr.mxu1 %v434_v6  ;;  %v350_v43 = vld [vmem:[%s1179_s12 + $0x148] sm:$0xff]  ;;  %v415_v44 = vld [vmem:[%s1179_s12 + $0x350] sm:$0xff]  ;;  %v349_v45 = vld [vmem:[%s1179_s12 + $0x140] sm:$0xff] }
  0x5d   : > { %549 = vmatprep.subr.mxu0 %v368_v7  ;;  %619 = vmatpush2.msra.mxu1 %v433_v8  ;;  %v414_v46 = vld [vmem:[%s1179_s12 + $0x348] sm:$0xff]  ;;  %v348_v47 = vld [vmem:[%s1179_s12 + $0x138] sm:$0xff]  ;;  %v413_v48 = vld [vmem:[%s1179_s12 + $0x340] sm:$0xff] }
  0x5e   : > { %550 = vmatpush2.msra.mxu0 %v367_v9  ;;  %620 = vmatprep.subr.mxu1 %v432_v10  ;;  %v347_v49 = vld [vmem:[%s1179_s12 + $0x130] sm:$0xff]  ;;  %v412_v50 = vld [vmem:[%s1179_s12 + $0x338] sm:$0xff]  ;;  %v346_v51 = vld [vmem:[%s1179_s12 + $0x128] sm:$0xff] }
  0x5f   : > { %551 = vmatprep.subr.mxu0 %v366_v11  ;;  %621 = vmatpush2.msra.mxu1 %v431_v12  ;;  %v411_v52 = vld [vmem:[%s1179_s12 + $0x330] sm:$0xff]  ;;  %v345_v53 = vld [vmem:[%s1179_s12 + $0x120] sm:$0xff]  ;;  %v410_v54 = vld [vmem:[%s1179_s12 + $0x328] sm:$0xff] }
  0x60   : > { %552 = vmatpush2.msra.mxu0 %v365_v13  ;;  %622 = vmatprep.subr.mxu1 %v430_v14  ;;  %v344_v55 = vld [vmem:[%s1179_s12 + $0x118] sm:$0xff]  ;;  %v409_v56 = vld [vmem:[%s1179_s12 + $0x320] sm:$0xff]  ;;  %v343_v57 = vld [vmem:[%s1179_s12 + $0x110] sm:$0xff] }
  0x61   : > { %553 = vmatprep.subr.mxu0 %v364_v15  ;;  %623 = vmatpush2.msra.mxu1 %v429_v16  ;;  %v408_v58 = vld [vmem:[%s1179_s12 + $0x318] sm:$0xff]  ;;  %v342_v59 = vld [vmem:[%s1179_s12 + $0x108] sm:$0xff]  ;;  %v341_v61 = vld [vmem:[%s1179_s12 + $0x100] sm:$0xff] }
  0x62   : > { %554 = vmatpush2.msra.mxu0 %v363_v17  ;;  %624 = vmatprep.subr.mxu1 %v428_v18  ;;  %v304_v60 = vld [vmem:[%s1424_s0 + $0x8] sm:$0xff]  ;;  %v407_v62 = vld [vmem:[%s1179_s12 + $0x310] sm:$0xff]  ;;  %v303_v63 = vld [vmem:[%s1424_s0] sm:$0xff] }
  0x63   : > { %555 = vmatprep.subr.mxu0 %v362_v19  ;;  %625 = vmatpush2.msra.mxu1 %v427_v20  ;;  %v406_v0 = vld [vmem:[%s1179_s12 + $0x308] sm:$0xff]  ;;  %v468_v1 = vld [vmem:[%s1179_s12 + $0x4f8] sm:$0xff]  ;;  %v405_v2 = vld [vmem:[%s1179_s12 + $0x300] sm:$0xff] }
  0x64   : > { %556 = vmatpush2.msra.mxu0 %v361_v21  ;;  %626 = vmatprep.subr.mxu1 %v426_v22  ;;  %v306_v3 = vld [vmem:[%s1424_s0 + $0x18] sm:$0xff]  ;;  %v467_v4 = vld [vmem:[%s1179_s12 + $0x4f0] sm:$0xff]  ;;  %v466_v6 = vld [vmem:[%s1179_s12 + $0x4e8] sm:$0xff] }
  0x65   : > { %557 = vmatprep.subr.mxu0 %v360_v23  ;;  %627 = vmatpush2.msra.mxu1 %v425_v24  ;;  %v305_v5 = vld [vmem:[%s1424_s0 + $0x10] sm:$0xff]  ;;  %v465_v7 = vld [vmem:[%s1179_s12 + $0x4e0] sm:$0xff]  ;;  %v308_v8 = vld [vmem:[%s1424_s0 + $0x28] sm:$0xff] }
  0x66   : > { %558 = vmatpush2.msra.mxu0 %v359_v25  ;;  %628 = vmatprep.subr.mxu1 %v424_v26  ;;  %v464_v9 = vld [vmem:[%s1179_s12 + $0x4d8] sm:$0xff]  ;;  %v463_v10 = vld [vmem:[%s1179_s12 + $0x4d0] sm:$0xff]  ;;  %v462_v11 = vld [vmem:[%s1179_s12 + $0x4c8] sm:$0xff] }
  0x67   : > { %559 = vmatprep.subr.mxu0 %v358_v27  ;;  %629 = vmatpush2.msra.mxu1 %v423_v28  ;;  %v461_v12 = vld [vmem:[%s1179_s12 + $0x4c0] sm:$0xff]  ;;  %v460_v13 = vld [vmem:[%s1179_s12 + $0x4b8] sm:$0xff]  ;;  %v459_v14 = vld [vmem:[%s1179_s12 + $0x4b0] sm:$0xff] }
  0x68   : > { %560 = vmatpush2.msra.mxu0 %v357_v29  ;;  %630 = vmatprep.subr.mxu1 %v422_v30  ;;  %v458_v15 = vld [vmem:[%s1179_s12 + $0x4a8] sm:$0xff]  ;;  %v457_v16 = vld [vmem:[%s1179_s12 + $0x4a0] sm:$0xff]  ;;  %v456_v17 = vld [vmem:[%s1179_s12 + $0x498] sm:$0xff] }
  0x69   : > { %561 = vmatprep.subr.mxu0 %v356_v31  ;;  %631 = vmatpush2.msra.mxu1 %v421_v32  ;;  %v455_v18 = vld [vmem:[%s1179_s12 + $0x490] sm:$0xff]  ;;  %v454_v19 = vld [vmem:[%s1179_s12 + $0x488] sm:$0xff]  ;;  %v453_v20 = vld [vmem:[%s1179_s12 + $0x480] sm:$0xff] }
  0x6a   : > { %562 = vmatpush2.msra.mxu0 %v355_v33  ;;  %632 = vmatprep.subr.mxu1 %v420_v34  ;;  %v452_v21 = vld [vmem:[%s1179_s12 + $0x478] sm:$0xff]  ;;  %v451_v22 = vld [vmem:[%s1179_s12 + $0x470] sm:$0xff]  ;;  %v450_v23 = vld [vmem:[%s1179_s12 + $0x468] sm:$0xff] }
  0x6b   : > { %563 = vmatprep.subr.mxu0 %v354_v35  ;;  %633 = vmatpush2.msra.mxu1 %v419_v36  ;;  %v449_v24 = vld [vmem:[%s1179_s12 + $0x460] sm:$0xff]  ;;  %v448_v25 = vld [vmem:[%s1179_s12 + $0x458] sm:$0xff]  ;;  %v447_v26 = vld [vmem:[%s1179_s12 + $0x450] sm:$0xff] }
  0x6c   : > { %564 = vmatpush2.msra.mxu0 %v353_v37  ;;  %634 = vmatprep.subr.mxu1 %v418_v38  ;;  %v446_v27 = vld [vmem:[%s1179_s12 + $0x448] sm:$0xff]  ;;  %v445_v28 = vld [vmem:[%s1179_s12 + $0x440] sm:$0xff]  ;;  %v444_v29 = vld [vmem:[%s1179_s12 + $0x438] sm:$0xff] }
  0x6d   : > { %565 = vmatprep.subr.mxu0 %v352_v39  ;;  %635 = vmatpush2.msra.mxu1 %v417_v40  ;;  %v443_v30 = vld [vmem:[%s1179_s12 + $0x430] sm:$0xff]  ;;  %v442_v31 = vld [vmem:[%s1179_s12 + $0x428] sm:$0xff]  ;;  %v441_v32 = vld [vmem:[%s1179_s12 + $0x420] sm:$0xff] }
  0x6e   : > { %566 = vmatpush2.msra.mxu0 %v351_v41  ;;  %636 = vmatprep.subr.mxu1 %v416_v42  ;;  %v440_v33 = vld [vmem:[%s1179_s12 + $0x418] sm:$0xff]  ;;  %v439_v34 = vld [vmem:[%s1179_s12 + $0x410] sm:$0xff]  ;;  %v438_v35 = vld [vmem:[%s1179_s12 + $0x408] sm:$0xff] }
  0x6f   : > { %567 = vmatprep.subr.mxu0 %v350_v43  ;;  %637 = vmatpush2.msra.mxu1 %v415_v44  ;;  %v437_v36 = vld [vmem:[%s1179_s12 + $0x400] sm:$0xff]  ;;  %v500_v37 = vld [vmem:[%s1179_s12 + $0x5f8] sm:$0xff]  ;;  %v499_v38 = vld [vmem:[%s1179_s12 + $0x5f0] sm:$0xff] }
  0x70   : > { %568 = vmatpush2.msra.mxu0 %v349_v45  ;;  %638 = vmatprep.subr.mxu1 %v414_v46  ;;  %v498_v39 = vld [vmem:[%s1179_s12 + $0x5e8] sm:$0xff]  ;;  %v497_v40 = vld [vmem:[%s1179_s12 + $0x5e0] sm:$0xff]  ;;  %v496_v41 = vld [vmem:[%s1179_s12 + $0x5d8] sm:$0xff] }
  0x71   : > { %569 = vmatprep.subr.mxu0 %v348_v47  ;;  %639 = vmatpush2.msra.mxu1 %v413_v48  ;;  %v495_v42 = vld [vmem:[%s1179_s12 + $0x5d0] sm:$0xff]  ;;  %v494_v43 = vld [vmem:[%s1179_s12 + $0x5c8] sm:$0xff]  ;;  %v493_v44 = vld [vmem:[%s1179_s12 + $0x5c0] sm:$0xff] }
  0x72   : > { %570 = vmatpush2.msra.mxu0 %v347_v49  ;;  %640 = vmatprep.subr.mxu1 %v412_v50  ;;  %v492_v45 = vld [vmem:[%s1179_s12 + $0x5b8] sm:$0xff]  ;;  %v491_v46 = vld [vmem:[%s1179_s12 + $0x5b0] sm:$0xff]  ;;  %v490_v47 = vld [vmem:[%s1179_s12 + $0x5a8] sm:$0xff] }
  0x73   : > { %571 = vmatprep.subr.mxu0 %v346_v51  ;;  %641 = vmatpush2.msra.mxu1 %v411_v52  ;;  %v489_v48 = vld [vmem:[%s1179_s12 + $0x5a0] sm:$0xff]  ;;  %v488_v49 = vld [vmem:[%s1179_s12 + $0x598] sm:$0xff]  ;;  %v487_v50 = vld [vmem:[%s1179_s12 + $0x590] sm:$0xff] }
  0x74   : > { %572 = vmatpush2.msra.mxu0 %v345_v53  ;;  %642 = vmatprep.subr.mxu1 %v410_v54  ;;  %v486_v51 = vld [vmem:[%s1179_s12 + $0x588] sm:$0xff]  ;;  %v485_v52 = vld [vmem:[%s1179_s12 + $0x580] sm:$0xff]  ;;  %v484_v53 = vld [vmem:[%s1179_s12 + $0x578] sm:$0xff] }
  0x75   : > { %573 = vmatprep.subr.mxu0 %v344_v55  ;;  %643 = vmatpush2.msra.mxu1 %v409_v56  ;;  %v483_v54 = vld [vmem:[%s1179_s12 + $0x570] sm:$0xff]  ;;  %v482_v55 = vld [vmem:[%s1179_s12 + $0x568] sm:$0xff]  ;;  %v481_v56 = vld [vmem:[%s1179_s12 + $0x560] sm:$0xff] }
  0x76   : > { %574 = vmatpush2.msra.mxu0 %v343_v57  ;;  %644 = vmatprep.subr.mxu1 %v408_v58  ;;  %v480_v57 = vld [vmem:[%s1179_s12 + $0x558] sm:$0xff]  ;;  %v479_v58 = vld [vmem:[%s1179_s12 + $0x550] sm:$0xff] }
  0x77   : > { %575 = vmatprep.subr.mxu0 %v342_v59  ;;  %577 = vmatprep.mubr.f32.mxu0 %v304_v60  ;;  %v478_v59 = vld [vmem:[%s1179_s12 + $0x548] sm:$0xff]  ;;  %v477_v60 = vld [vmem:[%s1179_s12 + $0x540] sm:$0xff] }
  0x78   : > { %576 = vmatpush2.msra.mxu0 %v341_v61  ;;  %645 = vmatpush2.msra.mxu1 %v407_v62  ;;  %v476_v61 = vld [vmem:[%s1179_s12 + $0x538] sm:$0xff]  ;;  %v475_v62 = vld [vmem:[%s1179_s12 + $0x530] sm:$0xff] }
  0x79   : > { %578 = vmatmul.mubr.f32.vlgmr.msra.gmra.mxu0 %v303_v63  ;;  %646 = vmatprep.subr.mxu1 %v406_v0  ;;  %v474_v63 = vld [vmem:[%s1179_s12 + $0x528] sm:$0xff]  ;;  %v473_v0 = vld [vmem:[%s1179_s12 + $0x520] sm:$0xff] }
  0x7a   : > { %655 = vmatprep.subr.mxu0 %v468_v1  ;;  %647 = vmatpush2.msra.mxu1 %v405_v2  ;;  %v472_v1 = vld [vmem:[%s1179_s12 + $0x518] sm:$0xff]  ;;  %v471_v2 = vld [vmem:[%s1179_s12 + $0x510] sm:$0xff] }
  0x7b   : > { %648 = vmatprep.mubr.f32.mxu1 %v306_v3  ;;  %656 = vmatpush1.msra.mxu0 %v467_v4  ;;  %v470_v3 = vld [vmem:[%s1179_s12 + $0x508] sm:$0xff]  ;;  %v469_v4 = vld [vmem:[%s1179_s12 + $0x500] sm:$0xff]  ;;  %s301_s12 = scalar_lea.vmem %s1427_s3, %s883_s24 }
  0x7c   : > { %649 = vmatmul.mubr.f32.vlgmr.msra.gmra.mxu1 %v305_v5  ;;  %657 = vmatprep.subr.mxu0 %v466_v6  ;;  %v307_v5 = vld [vmem:[%s1424_s0 + $0x20] sm:$0xff]  ;;  %v503_v6 = vlaneseq }
  0x7d   : > { %658 = vmatpush1.msra.mxu0 %v465_v7  ;;  %719 = vmatprep.mubr.f32.mxu0 %v308_v8 }
  0x7e   : > { %659 = vmatprep.subr.mxu0 %v464_v9  ;;  %v504_v7 = vshrl.u32 %v503_v6, 7  ;;  %v501_v9 = vld [vmem:[%s1185_s30] sm:$0x3] }
  0x7f   : > { %660 = vmatpush1.msra.mxu0 %v463_v10 }
  0x80   : > { %661 = vmatprep.subr.mxu0 %v462_v11  ;;  %v505_v8 = vsub.s32 0, %v504_v7  ;;  %v509_v10 = vsub.s32 1, %v504_v7 }
  0x81   : > { %662 = vmatpush1.msra.mxu0 %v461_v12 }
  0x82   : > { %663 = vmatprep.subr.mxu0 %v460_v13  ;;  %v506_v12 = vrot.slane %v501_v9, %v505_v8  ;;  %v510_v13 = vrot.slane %v501_v9, %v509_v10 }
  0x83   : > { %664 = vmatpush1.msra.mxu0 %v459_v14 }
  0x84   : > { %665 = vmatprep.subr.mxu0 %v458_v15 }
  0x85   : > { %666 = vmatpush1.msra.mxu0 %v457_v16 }
  0x86   : > { %667 = vmatprep.subr.mxu0 %v456_v17 }
  0x87   : > { %668 = vmatpush1.msra.mxu0 %v455_v18 }
  0x88   : > { %669 = vmatprep.subr.mxu0 %v454_v19 }
  0x89   : > { %670 = vmatpush1.msra.mxu0 %v453_v20 }
  0x8a   : > { %671 = vmatprep.subr.mxu0 %v452_v21 }
  0x8b   : > { %672 = vmatpush1.msra.mxu0 %v451_v22 }
  0x8c   : > { %673 = vmatprep.subr.mxu0 %v450_v23 }
  0x8d   : > { %674 = vmatpush1.msra.mxu0 %v449_v24 }
  0x8e   : > { %675 = vmatprep.subr.mxu0 %v448_v25 }
  0x8f   : > { %676 = vmatpush1.msra.mxu0 %v447_v26 }
  0x90   : > { %677 = vmatprep.subr.mxu0 %v446_v27 }
  0x91   : > { %678 = vmatpush1.msra.mxu0 %v445_v28 }
  0x92   : > { %679 = vmatprep.subr.mxu0 %v444_v29 }
  0x93   : > { %680 = vmatpush1.msra.mxu0 %v443_v30 }
  0x94   : > { %681 = vmatprep.subr.mxu0 %v442_v31 }
  0x95   : > { %682 = vmatpush1.msra.mxu0 %v441_v32 }
  0x96   : > { %683 = vmatprep.subr.mxu0 %v440_v33 }
  0x97   : > { %684 = vmatpush1.msra.mxu0 %v439_v34 }
  0x98   : > { %685 = vmatprep.subr.mxu0 %v438_v35 }
  0x99   : > { %686 = vmatpush1.msra.mxu0 %v437_v36 }
  0x9a   : > { %687 = vmatprep.subr.mxu0 %v500_v37 }
  0x9b   : > { %688 = vmatpush2.msra.mxu0 %v499_v38 }
  0x9c   : > { %689 = vmatprep.subr.mxu0 %v498_v39 }
  0x9d   : > { %690 = vmatpush2.msra.mxu0 %v497_v40 }
  0x9e   : > { %691 = vmatprep.subr.mxu0 %v496_v41 }
  0x9f   : > { %692 = vmatpush2.msra.mxu0 %v495_v42 }
  0xa0   : > { %693 = vmatprep.subr.mxu0 %v494_v43 }
  0xa1   : > { %694 = vmatpush2.msra.mxu0 %v493_v44 }
  0xa2   : > { %695 = vmatprep.subr.mxu0 %v492_v45 }
  0xa3   : > { %696 = vmatpush2.msra.mxu0 %v491_v46 }
  0xa4   : > { %697 = vmatprep.subr.mxu0 %v490_v47 }
  0xa5   : > { %698 = vmatpush2.msra.mxu0 %v489_v48 }
  0xa6   : > { %699 = vmatprep.subr.mxu0 %v488_v49 }
  0xa7   : > { %700 = vmatpush2.msra.mxu0 %v487_v50 }
  0xa8   : > { %701 = vmatprep.subr.mxu0 %v486_v51 }
  0xa9   : > { %702 = vmatpush2.msra.mxu0 %v485_v52 }
  0xaa   : > { %703 = vmatprep.subr.mxu0 %v484_v53 }
  0xab   : > { %704 = vmatpush2.msra.mxu0 %v483_v54 }
  0xac   : > { %705 = vmatprep.subr.mxu0 %v482_v55 }
  0xad   : > { %706 = vmatpush2.msra.mxu0 %v481_v56 }
  0xae   : > { %707 = vmatprep.subr.mxu0 %v480_v57 }
  0xaf   : > { %708 = vmatpush2.msra.mxu0 %v479_v58 }
  0xb0   : > { %709 = vmatprep.subr.mxu0 %v478_v59 }
  0xb1   : > { %710 = vmatpush2.msra.mxu0 %v477_v60 }
  0xb2   : > { %711 = vmatprep.subr.mxu0 %v476_v61 }
  0xb3   : > { %712 = vmatpush2.msra.mxu0 %v475_v62 }
  0xb4   : > { %713 = vmatprep.subr.mxu0 %v474_v63 }
  0xb5   : > { %714 = vmatpush2.msra.mxu0 %v473_v0 }
  0xb6   : > { %715 = vmatprep.subr.mxu0 %v472_v1 }
  0xb7   : > { %716 = vmatpush2.msra.mxu0 %v471_v2 }
  0xb8   : > { %717 = vmatprep.subr.mxu0 %v470_v3 }
  0xb9   : > { %718 = vmatpush2.msra.mxu0 %v469_v4 }
  0xba   : > { %720 = vmatmul.mubr.f32.vlgmr.msra.gmra.mxu0 %v307_v5 }
 0x139   : > { %v579_v11 = vpop.f32.mrf.mxu0 }
 0x13a   : > { %v580_v16 = vadd.f32 %v579_v11, %v506_v12 }
 0x13b   : > { %v581_v14 = vpop.f32.mrf.mxu0 }
 0x13c   : > { %v650_v15 = vpop.f32.mrf.mxu1  ;;  %v582_v17 = vadd.f32 %v581_v14, %v510_v13 }
 0x13d   : > { %v651_v19 = vadd.f32 %v650_v15, %v580_v16 }
 0x13e   : > { %v652_v18 = vpop.f32.mrf.mxu1 }
 0x13f   : > { %v653_v21 = vadd.f32 %v652_v18, %v582_v17 }
 0x17a   : > { %v721_v20 = vpop.f32.mrf.mxu0 }
 0x17b   : > { %v722_v22 = vadd.f32 %v721_v20, %v651_v19 }
 0x17c   : > { %v723_v23 = vpop.f32.mrf.mxu0 }
 0x17d   : > { %726 = vst [vmem:[%s301_s12] sm:$0xff] %v722_v22  ;;  %v724_v24 = vadd.f32 %v723_v23, %v653_v21 }
 0x17f   : > { %727 = vst [vmem:[%s301_s12 + $0x8] sm:$0xff] %v724_v24 }
 0x180 PF: > { %s19_s17 = sadd.s32 1, %s1063_s17   ;;  %s1431_s12 = smov %s1047_s13 }
 0x181   : > { %p16_p9 = scmp.ge.s32.totalorder %s19_s17, 4   ;;  %s1432_s13 = smov %s1051_s14 }
 0x182   : > { %s1433_s14 = smov %s1135_s23  ;;  %s1434_s15 = smov %s1059_s16 }
 0x183   : > { %s1435_s16 = smov %s1437_s19  ;;  %18 = sbr.rel (!%p16_p9) target bundleno = 6 (0x6), region = 88 }
 0x188   :  { %758 = vsyncpa [#allocation3], 1 }
 0x189   :  { %760 = vsyncpa [#allocation3 + $0x1], 1 }
 0x18a   :  { %761 = vsyncpa [#allocation5], 1 }
 0x18b   :  { %763 = vsyncpa [#allocation5 + $0x1], 1 }

</bundles_post_ra>
